<compile_context>
chip_gen: v6e
topology: v6e:2x2x1
jax: 0.10.0
libtpu: 0.0.40
codegen_flags: <defaults>
</compile_context>

<pallas_src>
import jax
import jax.numpy as jnp
import numpy as np
from jax.experimental import pallas as pl
from jax.experimental.pallas import tpu as pltpu

NEG_SLOPE = 0.2        # GATConv default negative_slope
NEG_INF = -1e30
LANE = 128
# Set to jnp.bfloat16 on v6e/v7x for ~2x MXU rate on the (N,N)@(N,C) aggregation
# (requires relaxing the test tolerance); keep f32 on v5e.
AGG_DTYPE = jnp.float32


def _round_up(n, m):
    return ((n + m - 1) // m) * m


# --------------------------------------------------------------------------
# Kernel 1: fused projection  hz = x @ Wf   (Wf = [W | 0 | W@a_dst | W@a_src])
# --------------------------------------------------------------------------
def _project_kernel(x_ref, wf_ref, hz_ref):
    hz_ref[...] = jnp.dot(x_ref[...], wf_ref[...],
                          preferred_element_type=jnp.float32)


def _project(x, wf):
    n = x.shape[0]
    c = wf.shape[1]
    vmem = pl.BlockSpec(memory_space=pltpu.MemorySpace.VMEM)
    return pl.pallas_call(
        _project_kernel,
        out_shape=jax.ShapeDtypeStruct((n, c), jnp.float32),
        in_specs=[vmem, vmem],
        out_specs=vmem,
    )(x, wf)


# --------------------------------------------------------------------------
# Shared attention core (masked softmax + aggregation + bias), per row tile
# --------------------------------------------------------------------------
def _attn_core(adj_ref, adst_ref, asrc_ref, hz_ref, bias_ref):
    # adj_ref : (TM, N) int8  0/1 edge mask (adj[i, j]=1 iff edge j -> i)
    # adst_ref: (TM, 1) f32   alpha_dst for this tile of target rows
    # asrc_ref: (1,  N) f32   alpha_src for all source nodes (row vector)
    # hz_ref  : (N,  C) f32   projected features (+ alpha cols) for all nodes
    # bias_ref: (1,  C) f32   lane-padded bias
    s = adst_ref[...] + asrc_ref[...]                       # (TM, N)
    s = jnp.where(s > 0, s, NEG_SLOPE * s)                  # LeakyReLU
    adj = adj_ref[...].astype(jnp.float32)
    s = jnp.where(adj == 0.0, NEG_INF, s)                   # single mask pass
    m = jnp.max(s, axis=1, keepdims=True)                   # finite (self loops)
    p = jnp.exp(s - m)                                      # non-edges underflow to 0
    denom = jnp.sum(p, axis=1, keepdims=True)               # >= 1
    agg = jnp.dot(p.astype(AGG_DTYPE), hz_ref[...].astype(AGG_DTYPE),
                  preferred_element_type=jnp.float32)       # (TM, C)
    # Fold the softmax normalization into the small (TM, C) output scaling.
    return agg * pl.reciprocal(denom, approx=True) + bias_ref[...]


# Kernel 2: attention layer 1 + ReLU + fused projection by next layer's weights
def _attn_relu_proj_kernel(adj_ref, adst_ref, asrc_ref, hz_ref, bias_ref,
                           wn_ref, out_ref):
    h = jnp.maximum(_attn_core(adj_ref, adst_ref, asrc_ref, hz_ref, bias_ref), 0.0)
    # TODO(synk): nn.Dropout(droprate) is stochastic in train mode; eval-mode identity here.
    out_ref[...] = jnp.dot(h, wn_ref[...], preferred_element_type=jnp.float32)


# Kernel 3: attention layer 2 + log_softmax over the lane-padded label dim
def _attn_logsoftmax_kernel(adj_ref, adst_ref, asrc_ref, hz_ref, bias_ref,
                            out_ref):
    h = _attn_core(adj_ref, adst_ref, asrc_ref, hz_ref, bias_ref)
    mx = jnp.max(h, axis=1, keepdims=True)                  # pads carry NEG_INF bias
    z = h - mx
    lse = jnp.log(jnp.sum(jnp.exp(z), axis=1, keepdims=True))
    out_ref[...] = z - lse


def _alpha_views(hz):
    n, c = hz.shape
    adst = hz[:, c - 2:c - 1]               # (N, 1)  target-side logits
    asrc = hz[:, c - 1].reshape(1, n)       # (1, N)  source-side logits (row)
    return adst, asrc


_COMPILER_PARAMS = pltpu.CompilerParams(
    dimension_semantics=("parallel",),       # megacore on v7x
    # Raise toward ~100 MB on v5e/v6e (128 MiB VMEM) when scaling N;
    # keep well under 64 MiB on v7x.
    vmem_limit_bytes=32 * 1024 * 1024,
)


def _attention_relu_project(adj_i8, hz, bias, w_next, tm):
    n = adj_i8.shape[0]
    c = hz.shape[1]
    c_next = w_next.shape[1]
    adst, asrc = _alpha_views(hz)
    return pl.pallas_call(
        _attn_relu_proj_kernel,
        out_shape=jax.ShapeDtypeStruct((n, c_next), jnp.float32),
        grid=(n // tm,),
        in_specs=[
            pl.BlockSpec((tm, n), lambda i: (i, 0)),       # adj row tile (int8)
            pl.BlockSpec((tm, 1), lambda i: (i, 0)),       # alpha_dst rows
            pl.BlockSpec((1, n), lambda i: (0, 0)),        # alpha_src row (resident)
            pl.BlockSpec((n, c), lambda i: (0, 0)),        # hz (resident)
            pl.BlockSpec((1, c), lambda i: (0, 0)),        # bias
            pl.BlockSpec((c, c_next), lambda i: (0, 0)),   # next-layer fused weight
        ],
        out_specs=pl.BlockSpec((tm, c_next), lambda i: (i, 0)),
        compiler_params=_COMPILER_PARAMS,
    )(adj_i8, adst, asrc, hz, bias, w_next)


def _attention_logsoftmax(adj_i8, hz, bias, tm):
    n = adj_i8.shape[0]
    c = hz.shape[1]
    adst, asrc = _alpha_views(hz)
    return pl.pallas_call(
        _attn_logsoftmax_kernel,
        out_shape=jax.ShapeDtypeStruct((n, c), jnp.float32),
        grid=(n // tm,),
        in_specs=[
            pl.BlockSpec((tm, n), lambda i: (i, 0)),
            pl.BlockSpec((tm, 1), lambda i: (i, 0)),
            pl.BlockSpec((1, n), lambda i: (0, 0)),
            pl.BlockSpec((n, c), lambda i: (0, 0)),
            pl.BlockSpec((1, c), lambda i: (0, 0)),
        ],
        out_specs=pl.BlockSpec((tm, c), lambda i: (i, 0)),
        compiler_params=_COMPILER_PARAMS,
    )(adj_i8, adst, asrc, hz, bias)


# --------------------------------------------------------------------------
# Parameter fusion / padding (plain-JAX glue)
# --------------------------------------------------------------------------
def _fuse_layer_params(w, a_src, a_dst, b, c_pad, fin_pad=None, final_layer=False):
    """Wf = [W | 0 | W@a_dst | W@a_src] lane-padded to c_pad; padded bias."""
    fin, fout = w.shape
    wa_dst = w @ a_dst                                         # (fin, 1)
    wa_src = w @ a_src                                         # (fin, 1)
    zeros = jnp.zeros((fin, c_pad - fout - 2), jnp.float32)
    wf = jnp.concatenate([w, zeros, wa_dst, wa_src], axis=1)   # (fin, c_pad)
    if fin_pad is not None and fin_pad > fin:
        # Zero rows neutralize the previous layer's padded / alpha columns.
        wf = jnp.concatenate(
            [wf, jnp.zeros((fin_pad - fin, c_pad), jnp.float32)], axis=0)
    if final_layer:
        # NEG_INF bias kills padded + alpha columns before log_softmax.
        bpad = jnp.concatenate(
            [b, jnp.full((1, c_pad - fout), NEG_INF, jnp.float32)], axis=1)
    else:
        bpad = jnp.concatenate(
            [b, jnp.zeros((1, c_pad - fout), jnp.float32)], axis=1)
    return wf, bpad


def gat_forward(x, adj_i8, params, tm=128):
    """x: (N, F) f32; adj_i8: (N, N) int8, adj[i,j]=1 iff edge j->i (+self loops)."""
    n = x.shape[0]
    hid = params["w1"].shape[1]
    nl = params["w2"].shape[1]
    tm = min(tm, n)
    assert n % tm == 0 and tm % 8 == 0

    c1 = _round_up(hid + 2, LANE)   # lane-padded hidden width (+2 alpha cols)
    c2 = _round_up(nl + 2, LANE)    # lane-padded label width  (+2 alpha cols)

    w1f, b1p = _fuse_layer_params(params["w1"], params["a_src1"],
                                  params["a_dst1"], params["b1"], c1)
    w2f, b2p = _fuse_layer_params(params["w2"], params["a_src2"],
                                  params["a_dst2"], params["b2"], c2,
                                  fin_pad=c1, final_layer=True)

    hz1 = _project(x, w1f)                                        # (N, C1)
    hz2 = _attention_relu_project(adj_i8, hz1, b1p, w2f, tm)      # (N, C2)
    out = _attention_logsoftmax(adj_i8, hz2, b2p, tm)             # (N, C2)
    return out[:, :nl]                                            # drop lane padding


# --------------------------------------------------------------------------
# Params / data helpers and pure-JAX reference
# --------------------------------------------------------------------------
def init_params(key, num_feature, hiddim, num_label):
    ks = jax.random.split(key, 8)

    def glorot(k, shape):
        fan_in, fan_out = shape[0], shape[-1]
        lim = (6.0 / (fan_in + fan_out)) ** 0.5
        return jax.random.uniform(k, shape, jnp.float32, -lim, lim)

    return {
        "w1": glorot(ks[0], (num_feature, hiddim)),
        "a_src1": glorot(ks[1], (hiddim, 1)),
        "a_dst1": glorot(ks[2], (hiddim, 1)),
        "b1": jnp.zeros((1, hiddim), jnp.float32),
        "w2": glorot(ks[3], (hiddim, num_label)),
        "a_src2": glorot(ks[4], (num_label, 1)),
        "a_dst2": glorot(ks[5], (num_label, 1)),
        "b2": jnp.zeros((1, num_label), jnp.float32),
    }


def edge_index_to_adj(edge_index, num_nodes):
    """int8 mask: adj[i, j] = 1 iff edge j -> i (src=row0, dst=row1) + self loops.
    TODO(synk): duplicate (src, dst) edges collapse to one entry (dense-adj semantics)."""
    src, dst = edge_index[0], edge_index[1]
    adj = jnp.zeros((num_nodes, num_nodes), jnp.int8).at[dst, src].set(1)
    return jnp.maximum(adj, jnp.eye(num_nodes, dtype=jnp.int8))


def reference_forward(x, adj_i8, params):
    """Pure-JAX reference (exact division) for validation."""
    adj = adj_i8.astype(jnp.float32)

    def layer(h_in, w, a_s, a_d, b):
        h = h_in @ w
        e = (h @ a_d) + (h @ a_s).T
        e = jnp.where(e > 0, e, NEG_SLOPE * e)
        e = jnp.where(adj > 0, e, NEG_INF)
        p = jnp.exp(e - e.max(axis=1, keepdims=True))
        p = jnp.where(adj > 0, p, 0.0)
        attn = p / p.sum(axis=1, keepdims=True)
        return attn @ h + b

    h1 = jnp.maximum(
        layer(x, params["w1"], params["a_src1"], params["a_dst1"], params["b1"]), 0.0)
    h2 = layer(h1, params["w2"], params["a_src2"], params["a_dst2"], params["b2"])
    return jax.nn.log_softmax(h2, axis=1)


if __name__ == "__main__":
    key = jax.random.PRNGKey(0)
    k_x, k_e, k_p = jax.random.split(key, 3)

    N = 128            # number of graph nodes
    num_feature = 32
    hiddim = 32
    num_label = 8
    E = 512            # number of directed edges

    # data.x: node features; data.edge_index: (2, E) int edges (src, dst)
    x = jax.random.normal(k_x, (N, num_feature), jnp.float32)
    edge_index = jax.random.randint(k_e, (2, E), 0, N, jnp.int32)

    adj = edge_index_to_adj(edge_index, N)
    params = init_params(k_p, num_feature, hiddim, num_label)

    out = gat_forward(x, adj, params)
    out = jax.block_until_ready(out)

    ref = reference_forward(x, adj, params)
    # Tolerance accounts for the approximate EUP reciprocal used in-kernel.
    np.testing.assert_allclose(np.asarray(out), np.asarray(ref), rtol=2e-2, atol=2e-2)

    print("KERNEL_OK")
</pallas_src>

<mosaic_0001>
module attributes {stable_mosaic.version = 11 : i64} {
  func.func @_project_kernel(%arg0: memref<128x32xf32, #tpu.memory_space<vmem>>, %arg1: memref<32x128xf32, #tpu.memory_space<vmem>>, %arg2: memref<128x128xf32, #tpu.memory_space<vmem>>) attributes {dimension_semantics = [], scalar_prefetch = 0 : i64, scratch_operands = 0 : i64, tpu.core_type = #tpu.core_type<tc>} {
    %c0 = arith.constant 0 : index
    %c0_0 = arith.constant 0 : index
    %0 = vector.load %arg0[%c0, %c0_0] : memref<128x32xf32, #tpu.memory_space<vmem>>, vector<128x32xf32>
    %c0_1 = arith.constant 0 : index
    %c0_2 = arith.constant 0 : index
    %1 = vector.load %arg1[%c0_1, %c0_2] : memref<32x128xf32, #tpu.memory_space<vmem>>, vector<32x128xf32>
    %cst = arith.constant dense<0.000000e+00> : vector<128x128xf32>
    %2 = tpu.matmul %0, %1, %cst {dimension_numbers = #tpu.dot_dimension_numbers<[1], [0], [0], [1], [0, 0, 1, 1], [], []>} : vector<128x32xf32>, vector<32x128xf32>, vector<128x128xf32> -> vector<128x128xf32>
    %c0_3 = arith.constant 0 : index
    %c0_4 = arith.constant 0 : index
    %3 = vector.load %arg2[%c0_3, %c0_4] : memref<128x128xf32, #tpu.memory_space<vmem>>, vector<128x128xf32>
    tpu.vector_store %arg2[%c0_3, %c0_4], %2 {strides = array<i32>} : memref<128x128xf32, #tpu.memory_space<vmem>>, vector<128x128xf32>,
    return
  }
}

</mosaic_0001>

<bundles_post_ra>
// kernel: tpu_custom_call.1
= control target key start
LH: loop header
LB: loop body
LE: loop exit
PB: predicated region body
PF: predicated region fallthrough
CT: control target
= control target key end

     0   :  { %vm32_vm0 = vcmask 261120   ;;  %s456_s0 = inlined_call_operand.vmem [shape: f32[128,32], index: 0, kind: input, shape index: {}]   ;;  %s457_s1 = inlined_call_operand.vmem [shape: f32[32,128], index: 1, kind: input, shape index: {}]   ;;  %s458_s2 = inlined_call_operand.hbm [shape: f32[128,128], index: 2, kind: output, shape index: {}]  }
   0x1   :  { %v31_v0 = vld [vmem:[%s457_s1 + $0x18] sm:$0xff]  ;;  %v30_v1 = vld [vmem:[%s457_s1 + $0x10] sm:$0xff]  ;;  %v29_v2 = vld [vmem:[%s457_s1 + $0x8] sm:$0xff] }
   0x2   :  { %294 = vmatprep.subr.mxu0 %v31_v0  ;;  %326 = vmatprep.subr.mxu1 %v31_v0  ;;  %v28_v3 = vld [vmem:[%s457_s1] sm:$0xff] }
   0x3   :  { %295 = vmatpush3.msra.mxu0 %v31_v0  ;;  %330 = vmatpush3.msra.mxu1 %v31_v0  ;;  %v12_v4 = vld [vmem:[%s456_s0] sm:$0xff] }
   0x4   :  { %296 = vmatprep.subr.mxu0 %v30_v1  ;;  %327 = vmatprep.subr.mxu1 %v30_v1  ;;  %v20_v5 = vld [vmem:[%s456_s0 + $0x40] sm:$0xff] }
   0x5   :  { %297 = vmatpush3.msra.mxu0 %v30_v1  ;;  %331 = vmatpush3.msra.mxu1 %v30_v1 }
   0x6   :  { %298 = vmatprep.subr.mxu0 %v29_v2  ;;  %328 = vmatprep.subr.mxu1 %v29_v2 }
   0x7   :  { %299 = vmatpush3.msra.mxu0 %v29_v2  ;;  %332 = vmatpush3.msra.mxu1 %v29_v2 }
   0x8   :  { %7 = vsyncpa [#allocation3], 0  ;;  %300 = vmatprep.subr.mxu0 %v28_v3  ;;  %329 = vmatprep.subr.mxu1 %v28_v3  ;;  %v13_v6 = vld [vmem:[%s456_s0 + $0x8] sm:$0xff]  ;;  %v14_v8 = vld [vmem:[%s456_s0 + $0x10] sm:$0xff] }
   0x9   :  { %v21_v7 = vld [vmem:[%s456_s0 + $0x48] sm:$0xff]  ;;  %301 = vmatpush3.msra.mxu0 %v28_v3  ;;  %333 = vmatpush3.msra.mxu1 %v28_v3  ;;  %v22_v9 = vld [vmem:[%s456_s0 + $0x50] sm:$0xff]  ;;  %v15_v10 = vld [vmem:[%s456_s0 + $0x18] sm:$0xff] }
   0xa   :  { %302 = vmatprep.mubr.msk.f32.mxu0 %vm32_vm0, %v12_v4  ;;  %314 = vmatprep.mubr.msk.f32.mxu1 %vm32_vm0, %v20_v5  ;;  %v23_v11 = vld [vmem:[%s456_s0 + $0x58] sm:$0xff]  ;;  %v16_v12 = vld [vmem:[%s456_s0 + $0x20] sm:$0xff]  ;;  %v17_v14 = vld [vmem:[%s456_s0 + $0x28] sm:$0xff] }
   0xb   :  { %303 = vmatmul.mubr.msk.f32.vlgmr.msra.gmra.mxu0 %vm32_vm0, %v13_v6  ;;  %315 = vmatmul.mubr.msk.f32.vlgmr.msra.gmra.mxu1 %vm32_vm0, %v21_v7  ;;  %v24_v13 = vld [vmem:[%s456_s0 + $0x60] sm:$0xff]  ;;  %v25_v15 = vld [vmem:[%s456_s0 + $0x68] sm:$0xff]  ;;  %v18_v16 = vld [vmem:[%s456_s0 + $0x30] sm:$0xff] }
   0xc   :  { %305 = vmatprep.mubr.msk.f32.mxu0 %vm32_vm0, %v14_v8  ;;  %317 = vmatprep.mubr.msk.f32.mxu1 %vm32_vm0, %v22_v9  ;;  %v26_v17 = vld [vmem:[%s456_s0 + $0x70] sm:$0xff]  ;;  %v19_v18 = vld [vmem:[%s456_s0 + $0x38] sm:$0xff] }
   0xd   :  { %v27_v19 = vld [vmem:[%s456_s0 + $0x78] sm:$0xff]  ;;  %s359_s0 = smov [#allocation2]  }
   0xe   :  { %s247_s20 = sshll.u32 %s359_s0, 4  ;;  %s248_s20 = int_to_ptr.vmem [resolvable:$true] %s247_s20 }
   0xf   :  { %306 = vmatmul.mubr.msk.f32.gmra.mxu0 %vm32_vm0, %v15_v10  ;;  %318 = vmatmul.mubr.msk.f32.gmra.mxu1 %vm32_vm0, %v23_v11  ;;  %s337_s21 = scalar_lea.vmem %s248_s20, 2048  ;;  %p342_p1 = scmp.lt.s32.totalorder %s248_s20, %s248_s20 }
  0x10   :  { %308 = vmatprep.mubr.msk.f32.mxu0 %vm32_vm0, %v16_v12  ;;  %320 = vmatprep.mubr.msk.f32.mxu1 %vm32_vm0, %v24_v13  ;;  %p338_p0 = scmp.ne.s32.totalorder %s248_s20, %s337_s21  ;;  %p343_p2 = scmp.lt.s32.totalorder %s337_s21, %s337_s21 }
  0x12   :  { %p344_p3 = por %p343_p2, %p342_p1 }
  0x13   :  { %309 = vmatmul.mubr.msk.f32.gmra.mxu0 %vm32_vm0, %v17_v14  ;;  %321 = vmatmul.mubr.msk.f32.gmra.mxu1 %vm32_vm0, %v25_v15 }
  0x14   :  { %311 = vmatprep.mubr.msk.f32.mxu0 %vm32_vm0, %v18_v16  ;;  %323 = vmatprep.mubr.msk.f32.mxu1 %vm32_vm0, %v26_v17  ;;  %p345_p4 = pnand %p344_p3, %p338_p0 }
  0x17   :  { %312 = vmatmul.mubr.msk.f32.gmra.mxu0 %vm32_vm0, %v19_v18  ;;  %324 = vmatmul.mubr.msk.f32.gmra.mxu1 %vm32_vm0, %v27_v19 }
  0xcb   :  { %v304_v20 = vpop.f32.mrf.mxu0  ;;  %v316_v21 = vpop.f32.mrf.mxu1 }
  0xcc   :  { %227 = vst [vmem:[#allocation2 + $0x8] sm:$0xff] %v304_v20  ;;  %235 = vst [vmem:[#allocation2 + $0x48] sm:$0xff] %v316_v21 }
  0xcd   :  { %v147_v22 = vpop.f32.mrf.mxu0  ;;  %v187_v23 = vpop.f32.mrf.mxu1 }
  0xce   :  { %226 = vst [vmem:[#allocation2] sm:$0xff] %v147_v22  ;;  %234 = vst [vmem:[#allocation2 + $0x40] sm:$0xff] %v187_v23 }
  0xcf   :  { %v307_v24 = vpop.f32.mrf.mxu0  ;;  %v319_v25 = vpop.f32.mrf.mxu1 }
  0xd0   :  { %229 = vst [vmem:[#allocation2 + $0x18] sm:$0xff] %v307_v24  ;;  %237 = vst [vmem:[#allocation2 + $0x58] sm:$0xff] %v319_v25 }
  0xd1   :  { %v157_v26 = vpop.f32.mrf.mxu0  ;;  %v197_v27 = vpop.f32.mrf.mxu1 }
  0xd2   :  { %228 = vst [vmem:[#allocation2 + $0x10] sm:$0xff] %v157_v26  ;;  %236 = vst [vmem:[#allocation2 + $0x50] sm:$0xff] %v197_v27 }
  0xd3   :  { %v310_v28 = vpop.f32.mrf.mxu0  ;;  %v322_v29 = vpop.f32.mrf.mxu1 }
  0xd4   :  { %231 = vst [vmem:[#allocation2 + $0x28] sm:$0xff] %v310_v28  ;;  %239 = vst [vmem:[#allocation2 + $0x68] sm:$0xff] %v322_v29 }
  0xd5   :  { %v167_v30 = vpop.f32.mrf.mxu0  ;;  %v207_v31 = vpop.f32.mrf.mxu1 }
  0xd6   :  { %230 = vst [vmem:[#allocation2 + $0x20] sm:$0xff] %v167_v30  ;;  %238 = vst [vmem:[#allocation2 + $0x60] sm:$0xff] %v207_v31 }
  0xd7   :  { %v313_v32 = vpop.f32.mrf.mxu0  ;;  %v325_v33 = vpop.f32.mrf.mxu1 }
  0xd8   :  { %233 = vst [vmem:[#allocation2 + $0x38] sm:$0xff] %v313_v32  ;;  %241 = vst [vmem:[#allocation2 + $0x78] sm:$0xff] %v325_v33 }
  0xd9   :  { %v177_v34 = vpop.f32.mrf.mxu0  ;;  %v217_v35 = vpop.f32.mrf.mxu1 }
  0xda   :  { %232 = vst [vmem:[#allocation2 + $0x30] sm:$0xff] %v177_v34  ;;  %240 = vst [vmem:[#allocation2 + $0x70] sm:$0xff] %v217_v35 }
  0xdb   :  { %348 = shalt.err (!%p345_p4)
}
  0xdc   :  { %s360_s22 = smov 128   ;;  %s361_s1 = smov 8  }
  0xdd   :  { %253 = dma.vmem_to_hbm [thread:$0]  %s248_s20, 2048, %s458_s2, [#allocation3], %s360_s22, %s360_s22, %s361_s1  }
  0xde   :  { %357 = dma.done.wait [#allocation3], 2048  }
  0xdf   :  { %358 = vsyncadd [#allocation3], 4294965248 }
  0xe0   :  { %257 = vsyncpa [#allocation3], 1 }

</bundles_post_ra>
